<compile_context>
chip_gen: v7x
topology: tpu7x:2x2x1
jax: 0.10.0
libtpu: 0.0.40
codegen_flags: <defaults>
</compile_context>

<pallas_src>
import jax
import jax.numpy as jnp
from jax.experimental import pallas as pl
from jax.experimental.pallas import tpu as pltpu


def _round_up(x, m):
    return ((x + m - 1) // m) * m


def _pad_cols(x, n):
    c = x.shape[-1]
    if c == n:
        return x
    return jnp.pad(x, ((0, 0), (0, n - c)))


def _choose_row_tile(R):
    # Large tiles amortize the ~0.35us per-grid-step overhead, but keep >= 2 row tiles
    # once R is big enough so dimension_semantics=("parallel",...) can use both v7x TCs.
    if R <= 16:
        return int(R)                      # single full-extent row block (legal)
    return int(min(2048, _round_up(pl.cdiv(R, 2), 8)))


def _pack_avail_bits(avail, R, A):
    """Pack an (R, A) availability mask into one int32 bitmask per row, shape (R, 1)."""
    if avail is None:
        return jnp.full((R, 1), (1 << A) - 1, dtype=jnp.int32)
    avail_b = (jnp.asarray(avail) != 0)     # robust to non-binary float masks
    bits = jnp.zeros((R, 1), jnp.int32)
    for a in range(A):                      # A is small and static
        bits = bits | (avail_b[:, a:a + 1].astype(jnp.int32) << a)
    return bits


def maac_actor_kernel(ids_ref, obs_ref, bits_ref,
                      wrep_ref, brep_ref, wa1s_ref, wa1i_ref, ba1_ref,
                      wa2_ref, ba2_ref, logits_ref):
    # Basic_MLP actor representation: relu(obs @ W_rep + b_rep), f32 accumulation.
    state = jnp.dot(obs_ref[...], wrep_ref[...], preferred_element_type=jnp.float32)
    state = jnp.maximum(state + brep_ref[...], 0.0)

    # CategoricalActorNet hidden layer on concat([state, agent_ids]): split into two
    # matmuls (K = d_rep and K = n_agents). The tiny one-hot ids matmul replaces the
    # previously streamed (TR, d_hidden) f32 per-row bias (128 B/row -> ~6-12 B/row).
    h = (jnp.dot(state.astype(wa1s_ref.dtype), wa1s_ref[...],
                 preferred_element_type=jnp.float32)
         + jnp.dot(ids_ref[...], wa1i_ref[...], preferred_element_type=jnp.float32)
         + ba1_ref[...])
    h = jnp.maximum(h, 0.0)

    # Output layer -> logits; last dim is padded to 128 lanes -> dense (unmasked) stores.
    logits = jnp.dot(h.astype(wa2_ref.dtype), wa2_ref[...],
                     preferred_element_type=jnp.float32) + ba2_ref[...]

    # Availability mask: one packed int32 bitmask per row (bit a == action a available).
    # Expand in-kernel (VPU) and apply logits[unavailable] = -1e10.
    tr, a_pad = logits.shape
    act = jax.lax.broadcasted_iota(jnp.int32, (tr, a_pad), 1)
    avail_bit = (bits_ref[...] >> jnp.minimum(act, 31)) & 1
    logits = jnp.where(avail_bit == 0, jnp.float32(-1e10), logits)

    logits_ref[...] = logits.astype(logits_ref.dtype)


def _maac_actor_forward_group(keys, observation, agent_ids, avail_actions, params,
                              *, compute_dtype, out_dtype, row_tile):
    """Fused actor path for a group of model keys with identical shapes.

    Returns logits of shape (len(keys), R, A).
    """
    f32 = jnp.float32
    K = len(keys)
    R, d_obs = observation[keys[0]].shape
    p0 = params[keys[0]]
    d_rep = p0["W_rep"].shape[1]
    d_hidden = p0["W_a1_state"].shape[1]
    n_agents = p0["W_a1_ids"].shape[0]
    A = p0["W_a2"].shape[1]
    if A > 31:
        # TODO(synk): multi-word bitmask (or dense int8 mask) for action spaces > 31.
        raise NotImplementedError("bitmask avail path supports n_actions <= 31")
    A_pad = _round_up(A, 128)                 # lane-dense logits / W_a2 / b_a2

    if row_tile is not None:
        TR = _round_up(int(row_tile), 8)
    else:
        TR = _choose_row_tile(R)
    if TR >= R:
        TR = int(R)                           # single full-extent row block
    n_tiles = int(pl.cdiv(R, TR))             # partial tail tile handled by Pallas

    c_it = jnp.dtype(compute_dtype).itemsize
    o_it = jnp.dtype(out_dtype).itemsize

    # --- Row-streamed operands at natural shapes (no padded host copies) -----------
    obs_s = jnp.stack([observation[k] for k in keys], 0).astype(compute_dtype)   # (K,R,d_obs)
    ids_c = agent_ids.astype(compute_dtype)                                      # (R,n_agents)
    bits_s = jnp.stack(
        [_pack_avail_bits(None if avail_actions is None else avail_actions[k], R, A)
         for k in keys], 0)                                                       # (K,R,1) int32

    # --- VMEM-resident weights (bf16 operands by default, f32 biases), per key -----
    W_rep = jnp.stack([params[k]["W_rep"].astype(compute_dtype) for k in keys], 0)
    b_rep = jnp.stack([params[k]["b_rep"].astype(f32) for k in keys], 0)
    W_a1s = jnp.stack([params[k]["W_a1_state"].astype(compute_dtype) for k in keys], 0)
    W_a1i = jnp.stack([params[k]["W_a1_ids"].astype(compute_dtype) for k in keys], 0)
    b_a1 = jnp.stack([params[k]["b_a1"].astype(f32) for k in keys], 0)
    W_a2 = jnp.stack([_pad_cols(params[k]["W_a2"].astype(compute_dtype), A_pad)
                      for k in keys], 0)
    b_a2 = jnp.stack([_pad_cols(params[k]["b_a2"].astype(f32), A_pad) for k in keys], 0)

    # --- Cost estimate (advisory for XLA scheduling) --------------------------------
    flops = int(2 * K * R * (d_obs * d_rep + d_rep * d_hidden
                             + n_agents * d_hidden + d_hidden * A_pad))
    bytes_accessed = int(
        obs_s.size * c_it + ids_c.size * c_it + bits_s.size * 4
        + (W_rep.size + W_a1s.size + W_a1i.size + W_a2.size) * c_it
        + (b_rep.size + b_a1.size + b_a2.size) * 4
        + K * R * A_pad * o_it)
    ce = pl.CostEstimate(flops=flops, transcendentals=0, bytes_accessed=bytes_accessed)

    # --- VMEM budget: double-buffered streamed tiles + resident weights + f32
    #     intermediates, with generous headroom (well under v7x's 64 MiB physical VMEM).
    tile_bytes = TR * (d_obs * c_it + n_agents * c_it + 4) + TR * A_pad * o_it
    weight_bytes = (c_it * (d_obs * d_rep + d_rep * d_hidden
                            + n_agents * d_hidden + d_hidden * A_pad)
                    + 4 * (d_rep + d_hidden + A_pad))
    interm_bytes = 4 * TR * (d_rep + d_hidden + A_pad)
    vmem_limit = int(min(max(4 * (2 * (tile_bytes + weight_bytes) + interm_bytes),
                             8 << 20), 64 << 20))

    row3 = lambda shape: pl.BlockSpec(shape, lambda k, i: (k, i, 0))   # streamed per row tile
    key3 = lambda shape: pl.BlockSpec(shape, lambda k, i: (k, 0, 0))   # resident per model key

    out = pl.pallas_call(
        maac_actor_kernel,
        out_shape=jax.ShapeDtypeStruct((K, R, A_pad), out_dtype),
        grid=(K, n_tiles),
        in_specs=[
            pl.BlockSpec((TR, n_agents), lambda k, i: (i, 0)),   # one-hot agent ids (shared)
            row3((None, TR, d_obs)),                             # observations
            row3((None, TR, 1)),                                 # packed avail bitmask (int32)
            key3((None, d_obs, d_rep)),                          # W_rep
            key3((None, 1, d_rep)),                              # b_rep
            key3((None, d_rep, d_hidden)),                       # W_a1 (state block)
            key3((None, n_agents, d_hidden)),                    # W_a1 (agent-id block)
            key3((None, 1, d_hidden)),                           # b_a1
            key3((None, d_hidden, A_pad)),                       # W_a2 (lane-dense padded)
            key3((None, 1, A_pad)),                              # b_a2 (lane-dense padded)
        ],
        out_specs=row3((None, TR, A_pad)),
        compiler_params=pltpu.CompilerParams(
            dimension_semantics=("parallel", "parallel"),
            vmem_limit_bytes=vmem_limit),
        cost_estimate=ce,
    )(ids_c, obs_s, bits_s, W_rep, b_rep, W_a1s, W_a1i, b_a1, W_a2, b_a2)

    return out[:, :, :A]                     # (K, R, A)


def maac_policy_forward(observation, agent_ids, avail_actions, params, model_keys,
                        *, compute_dtype=jnp.bfloat16, out_dtype=jnp.float32,
                        row_tile=None):
    """Mirror MAAC_Policy.forward (use_rnn=False): returns (rnn_hidden_new, pi_dists).

    pi_dists[key] holds the masked Categorical logits (distribution parameters).
    """
    def sig(k):
        p = params[k]
        return (observation[k].shape, p["W_rep"].shape, p["W_a1_state"].shape,
                p["W_a1_ids"].shape, p["W_a2"].shape)

    # Stack all model keys into one pallas_call when their shapes match (amortizes
    # launch / pipeline warm-up and feeds both v7x TensorCores); otherwise per key.
    stackable = all(sig(k) == sig(model_keys[0]) for k in model_keys)
    groups = [list(model_keys)] if stackable else [[k] for k in model_keys]

    rnn_hidden_new, pi_dists = {}, {}
    for group in groups:
        logits = _maac_actor_forward_group(
            group, observation, agent_ids, avail_actions, params,
            compute_dtype=compute_dtype, out_dtype=out_dtype, row_tile=row_tile)
        for gi, k in enumerate(group):
            rnn_hidden_new[k] = [None, None]   # use_rnn = False
            pi_dists[k] = logits[gi]           # Categorical(logits=...) parameters
    return rnn_hidden_new, pi_dists


def make_params(key, d_obs, d_rep, n_agents, d_hidden, n_actions):
    """Deterministic synthetic parameters (shapes follow MAAC_Policy.__init__)."""
    ks = jax.random.split(key, 6)
    scale = 0.1
    return {
        # actor_representation[key]: Basic_MLP  (d_obs -> d_rep)
        "W_rep": scale * jax.random.normal(ks[0], (d_obs, d_rep), jnp.float32),
        "b_rep": jnp.zeros((1, d_rep), jnp.float32),
        # actor[key] hidden layer: (d_rep + n_agents) -> d_hidden, split by input block
        "W_a1_state": scale * jax.random.normal(ks[1], (d_rep, d_hidden), jnp.float32),
        "W_a1_ids": scale * jax.random.normal(ks[2], (n_agents, d_hidden), jnp.float32),
        "b_a1": jnp.zeros((1, d_hidden), jnp.float32),
        # actor[key] output layer: d_hidden -> n_actions (logits)
        "W_a2": scale * jax.random.normal(ks[3], (d_hidden, n_actions), jnp.float32),
        "b_a2": jnp.zeros((1, n_actions), jnp.float32),
    }


def _reference_logits(obs, agent_ids, avail, p):
    state_ref = jnp.maximum(obs @ p["W_rep"] + p["b_rep"], 0.0)
    actor_in = jnp.concatenate([state_ref, agent_ids], axis=-1)
    W_a1 = jnp.concatenate([p["W_a1_state"], p["W_a1_ids"]], axis=0)
    h_ref = jnp.maximum(actor_in @ W_a1 + p["b_a1"], 0.0)
    logits_ref = h_ref @ p["W_a2"] + p["b_a2"]
    return jnp.where(avail == 0, -1e10, logits_ref)


if __name__ == "__main__":
    batch, n_agents = 2, 3
    d_obs, d_rep, d_hidden, n_actions = 16, 32, 32, 5
    R = batch * n_agents     # parameter sharing: agents stacked along the batch axis

    key = jax.random.PRNGKey(0)
    k_obs, k_avail, k_par0, k_par1, k_obs2, k_avail2 = jax.random.split(key, 6)

    obs = jax.random.normal(k_obs, (R, d_obs), jnp.float32)
    agent_ids = jnp.tile(jnp.eye(n_agents, dtype=jnp.float32), (batch, 1))
    avail = (jax.random.uniform(k_avail, (R, n_actions)) > 0.3).astype(jnp.float32)
    avail = avail.at[:, 0].set(1.0)

    model_keys = ["agent_0"]
    params = {"agent_0": make_params(k_par0, d_obs, d_rep, n_agents, d_hidden, n_actions)}
    observation = {"agent_0": obs}
    avail_actions = {"agent_0": avail}
    p0 = params["agent_0"]
    ref = _reference_logits(obs, agent_ids, avail, p0)

    # 1) f32 path, single key, single full-extent row block --------------------------
    _, pi = maac_policy_forward(observation, agent_ids, avail_actions, params,
                                model_keys, compute_dtype=jnp.float32)
    logits = jax.block_until_ready(pi["agent_0"])
    assert logits.shape == (R, n_actions)
    assert jnp.allclose(logits, ref, atol=1e-4, rtol=1e-4)

    # 2) f32 path, multi-tile grid with a partial tail tile (144 rows, tile 64) ------
    batch2 = 48
    R2 = batch2 * n_agents
    obs2 = jax.random.normal(k_obs2, (R2, d_obs), jnp.float32)
    ids2 = jnp.tile(jnp.eye(n_agents, dtype=jnp.float32), (batch2, 1))
    avail2 = (jax.random.uniform(k_avail2, (R2, n_actions)) > 0.3).astype(jnp.float32)
    avail2 = avail2.at[:, 0].set(1.0)
    _, pi2 = maac_policy_forward({"agent_0": obs2}, ids2, {"agent_0": avail2}, params,
                                 model_keys, compute_dtype=jnp.float32, row_tile=64)
    logits2 = jax.block_until_ready(pi2["agent_0"])
    ref2 = _reference_logits(obs2, ids2, avail2, p0)
    assert logits2.shape == (R2, n_actions)
    assert jnp.allclose(logits2, ref2, atol=1e-4, rtol=1e-4)

    # 3) Two model keys fused in a single pallas_call (leading key grid axis) --------
    model_keys2 = ["agent_0", "agent_1"]
    params2 = {"agent_0": p0,
               "agent_1": make_params(k_par1, d_obs, d_rep, n_agents, d_hidden, n_actions)}
    obs_d = {"agent_0": obs, "agent_1": obs[::-1]}
    av_d = {"agent_0": avail, "agent_1": avail[::-1]}
    _, pi3 = maac_policy_forward(obs_d, agent_ids, av_d, params2, model_keys2,
                                 compute_dtype=jnp.float32)
    for k in model_keys2:
        lk = jax.block_until_ready(pi3[k])
        rk = _reference_logits(obs_d[k], agent_ids, av_d[k], params2[k])
        assert lk.shape == (R, n_actions)
        assert jnp.allclose(lk, rk, atol=1e-4, rtol=1e-4)

    # 4) Default bf16 MXU-operand path (f32 accumulation / biases), loose tolerance --
    _, pib = maac_policy_forward(observation, agent_ids, avail_actions, params, model_keys)
    logits_b = jax.block_until_ready(pib["agent_0"])
    assert logits_b.shape == (R, n_actions)
    assert jnp.allclose(logits_b, ref, atol=1e-1, rtol=1e-1)

    print("KERNEL_OK")
</pallas_src>

<mosaic_0001>
module attributes {stable_mosaic.version = 11 : i64} {
  func.func @maac_actor_kernel(%arg0: i32, %arg1: i32, %arg2: memref<6x3xf32, #tpu.memory_space<vmem>>, %arg3: memref<1x6x16xf32, #tpu.memory_space<vmem>>, %arg4: memref<1x6x1xi32, #tpu.memory_space<vmem>>, %arg5: memref<1x16x32xf32, #tpu.memory_space<vmem>>, %arg6: memref<1x1x32xf32, #tpu.memory_space<vmem>>, %arg7: memref<1x32x32xf32, #tpu.memory_space<vmem>>, %arg8: memref<1x3x32xf32, #tpu.memory_space<vmem>>, %arg9: memref<1x1x32xf32, #tpu.memory_space<vmem>>, %arg10: memref<1x32x128xf32, #tpu.memory_space<vmem>>, %arg11: memref<1x1x128xf32, #tpu.memory_space<vmem>>, %arg12: memref<1x6x128xf32, #tpu.memory_space<vmem>>) attributes {dimension_semantics = [#tpu.dimension_semantics<parallel>, #tpu.dimension_semantics<parallel>], iteration_bounds = array<i64: 1, 1>, scalar_prefetch = 0 : i64, scratch_operands = 0 : i64, tpu.core_type = #tpu.core_type<tc>, window_params = [{transform_indices = @transform_0, window_bounds = array<i64: 6, 3>}, {transform_indices = @transform_1, window_bounds = array<i64: 1, 6, 16>}, {transform_indices = @transform_2, window_bounds = array<i64: 1, 6, 1>}, {transform_indices = @transform_3, window_bounds = array<i64: 1, 16, 32>}, {transform_indices = @transform_4, window_bounds = array<i64: 1, 1, 32>}, {transform_indices = @transform_5, window_bounds = array<i64: 1, 32, 32>}, {transform_indices = @transform_6, window_bounds = array<i64: 1, 3, 32>}, {transform_indices = @transform_7, window_bounds = array<i64: 1, 1, 32>}, {transform_indices = @transform_8, window_bounds = array<i64: 1, 32, 128>}, {transform_indices = @transform_9, window_bounds = array<i64: 1, 1, 128>}, {transform_indices = @transform_10, window_bounds = array<i64: 1, 6, 128>}]} {
    %c0 = arith.constant 0 : index
    %c0_0 = arith.constant 0 : index
    %c0_1 = arith.constant 0 : index
    %0 = vector.load %arg3[%c0, %c0_0, %c0_1] : memref<1x6x16xf32, #tpu.memory_space<vmem>>, vector<1x6x16xf32>
    %1 = vector.shape_cast %0 : vector<1x6x16xf32> to vector<6x16xf32>
    %c0_2 = arith.constant 0 : index
    %c0_3 = arith.constant 0 : index
    %c0_4 = arith.constant 0 : index
    %2 = vector.load %arg5[%c0_2, %c0_3, %c0_4] : memref<1x16x32xf32, #tpu.memory_space<vmem>>, vector<1x16x32xf32>
    %3 = vector.shape_cast %2 : vector<1x16x32xf32> to vector<16x32xf32>
    %cst = arith.constant dense<0.000000e+00> : vector<6x32xf32>
    %4 = tpu.matmul %1, %3, %cst {dimension_numbers = #tpu.dot_dimension_numbers<[1], [0], [0], [1], [0, 0, 1, 1], [], []>} : vector<6x16xf32>, vector<16x32xf32>, vector<6x32xf32> -> vector<6x32xf32>
    %c0_5 = arith.constant 0 : index
    %c0_6 = arith.constant 0 : index
    %c0_7 = arith.constant 0 : index
    %5 = vector.load %arg6[%c0_5, %c0_6, %c0_7] : memref<1x1x32xf32, #tpu.memory_space<vmem>>, vector<1x1x32xf32>
    %6 = vector.shape_cast %5 : vector<1x1x32xf32> to vector<1x32xf32>
    %7 = vector.broadcast %6 : vector<1x32xf32> to vector<6x32xf32>
    %8 = arith.addf %4, %7 : vector<6x32xf32>
    %cst_8 = arith.constant 0.000000e+00 : f32
    %9 = vector.broadcast %cst_8 : f32 to vector<6x32xf32>
    %10 = arith.maximumf %8, %9 : vector<6x32xf32>
    %c0_9 = arith.constant 0 : index
    %c0_10 = arith.constant 0 : index
    %c0_11 = arith.constant 0 : index
    %11 = vector.load %arg7[%c0_9, %c0_10, %c0_11] : memref<1x32x32xf32, #tpu.memory_space<vmem>>, vector<1x32x32xf32>
    %12 = vector.shape_cast %11 : vector<1x32x32xf32> to vector<32x32xf32>
    %cst_12 = arith.constant dense<0.000000e+00> : vector<6x32xf32>
    %13 = tpu.matmul %10, %12, %cst_12 {dimension_numbers = #tpu.dot_dimension_numbers<[1], [0], [0], [1], [0, 0, 1, 1], [], []>} : vector<6x32xf32>, vector<32x32xf32>, vector<6x32xf32> -> vector<6x32xf32>
    %c0_13 = arith.constant 0 : index
    %c0_14 = arith.constant 0 : index
    %14 = vector.load %arg2[%c0_13, %c0_14] : memref<6x3xf32, #tpu.memory_space<vmem>>, vector<6x3xf32>
    %c0_15 = arith.constant 0 : index
    %c0_16 = arith.constant 0 : index
    %c0_17 = arith.constant 0 : index
    %15 = vector.load %arg8[%c0_15, %c0_16, %c0_17] : memref<1x3x32xf32, #tpu.memory_space<vmem>>, vector<1x3x32xf32>
    %16 = vector.shape_cast %15 : vector<1x3x32xf32> to vector<3x32xf32>
    %cst_18 = arith.constant dense<0.000000e+00> : vector<6x32xf32>
    %17 = tpu.matmul %14, %16, %cst_18 {dimension_numbers = #tpu.dot_dimension_numbers<[1], [0], [0], [1], [0, 0, 1, 1], [], []>} : vector<6x3xf32>, vector<3x32xf32>, vector<6x32xf32> -> vector<6x32xf32>
    %18 = arith.addf %13, %17 : vector<6x32xf32>
    %c0_19 = arith.constant 0 : index
    %c0_20 = arith.constant 0 : index
    %c0_21 = arith.constant 0 : index
    %19 = vector.load %arg9[%c0_19, %c0_20, %c0_21] : memref<1x1x32xf32, #tpu.memory_space<vmem>>, vector<1x1x32xf32>
    %20 = vector.shape_cast %19 : vector<1x1x32xf32> to vector<1x32xf32>
    %21 = vector.broadcast %20 : vector<1x32xf32> to vector<6x32xf32>
    %22 = arith.addf %18, %21 : vector<6x32xf32>
    %cst_22 = arith.constant 0.000000e+00 : f32
    %23 = vector.broadcast %cst_22 : f32 to vector<6x32xf32>
    %24 = arith.maximumf %22, %23 : vector<6x32xf32>
    %c0_23 = arith.constant 0 : index
    %c0_24 = arith.constant 0 : index
    %c0_25 = arith.constant 0 : index
    %25 = vector.load %arg10[%c0_23, %c0_24, %c0_25] : memref<1x32x128xf32, #tpu.memory_space<vmem>>, vector<1x32x128xf32>
    %26 = vector.shape_cast %25 : vector<1x32x128xf32> to vector<32x128xf32>
    %cst_26 = arith.constant dense<0.000000e+00> : vector<6x128xf32>
    %27 = tpu.matmul %24, %26, %cst_26 {dimension_numbers = #tpu.dot_dimension_numbers<[1], [0], [0], [1], [0, 0, 1, 1], [], []>} : vector<6x32xf32>, vector<32x128xf32>, vector<6x128xf32> -> vector<6x128xf32>
    %c0_27 = arith.constant 0 : index
    %c0_28 = arith.constant 0 : index
    %c0_29 = arith.constant 0 : index
    %28 = vector.load %arg11[%c0_27, %c0_28, %c0_29] : memref<1x1x128xf32, #tpu.memory_space<vmem>>, vector<1x1x128xf32>
    %29 = vector.shape_cast %28 : vector<1x1x128xf32> to vector<1x128xf32>
    %30 = vector.broadcast %29 : vector<1x128xf32> to vector<6x128xf32>
    %31 = arith.addf %27, %30 : vector<6x128xf32>
    %32 = tpu.iota {dimensions = array<i32: 1>} : vector<6x128xi32>
    %c0_30 = arith.constant 0 : index
    %c0_31 = arith.constant 0 : index
    %c0_32 = arith.constant 0 : index
    %33 = vector.load %arg4[%c0_30, %c0_31, %c0_32] : memref<1x6x1xi32, #tpu.memory_space<vmem>>, vector<1x6x1xi32>
    %34 = vector.shape_cast %33 : vector<1x6x1xi32> to vector<6x1xi32>
    %c31_i32 = arith.constant 31 : i32
    %35 = vector.broadcast %c31_i32 : i32 to vector<6x128xi32>
    %36 = arith.minsi %32, %35 : vector<6x128xi32>
    %37 = vector.broadcast %34 : vector<6x1xi32> to vector<6x128xi32>
    %38 = arith.shrsi %37, %36 : vector<6x128xi32>
    %c1_i32 = arith.constant 1 : i32
    %39 = vector.broadcast %c1_i32 : i32 to vector<6x128xi32>
    %40 = arith.andi %38, %39 : vector<6x128xi32>
    %c0_i32 = arith.constant 0 : i32
    %41 = vector.broadcast %c0_i32 : i32 to vector<6x128xi32>
    %42 = arith.cmpi eq, %40, %41 : vector<6x128xi32>
    %cst_33 = arith.constant -1.000000e+10 : f32
    %43 = vector.broadcast %cst_33 : f32 to vector<6x128xf32>
    %44 = arith.select %42, %43, %31 : vector<6x128xi1>, vector<6x128xf32>
    %c0_34 = arith.constant 0 : index
    %c0_35 = arith.constant 0 : index
    %c0_36 = arith.constant 0 : index
    %45 = vector.load %arg12[%c0_34, %c0_35, %c0_36] : memref<1x6x128xf32, #tpu.memory_space<vmem>>, vector<1x6x128xf32>
    %46 = vector.shape_cast %45 : vector<1x6x128xf32> to vector<6x128xf32>
    %47 = vector.shape_cast %44 : vector<6x128xf32> to vector<1x6x128xf32>
    tpu.vector_store %arg12[%c0_34, %c0_35, %c0_36], %47 {strides = array<i32>} : memref<1x6x128xf32, #tpu.memory_space<vmem>>, vector<1x6x128xf32>,
    return
  }
  func.func @transform_0(%arg0: i32, %arg1: i32) -> (i32, i32) {
    %c0_i32 = arith.constant 0 : i32
    %c0_i32_0 = arith.constant 0 : i32
    return %arg1, %c0_i32 : i32, i32
  }
  func.func @transform_1(%arg0: i32, %arg1: i32) -> (i32, i32, i32) {
    %c0_i32 = arith.constant 0 : i32
    %c0_i32_0 = arith.constant 0 : i32
    return %arg0, %arg1, %c0_i32 : i32, i32, i32
  }
  func.func @transform_2(%arg0: i32, %arg1: i32) -> (i32, i32, i32) {
    %c0_i32 = arith.constant 0 : i32
    %c0_i32_0 = arith.constant 0 : i32
    return %arg0, %arg1, %c0_i32 : i32, i32, i32
  }
  func.func @transform_3(%arg0: i32, %arg1: i32) -> (i32, i32, i32) {
    %c0_i32 = arith.constant 0 : i32
    %c0_i32_0 = arith.constant 0 : i32
    %c0_i32_1 = arith.constant 0 : i32
    return %arg0, %c0_i32, %c0_i32_0 : i32, i32, i32
  }
  func.func @transform_4(%arg0: i32, %arg1: i32) -> (i32, i32, i32) {
    %c0_i32 = arith.constant 0 : i32
    %c0_i32_0 = arith.constant 0 : i32
    %c0_i32_1 = arith.constant 0 : i32
    return %arg0, %c0_i32, %c0_i32_0 : i32, i32, i32
  }
  func.func @transform_5(%arg0: i32, %arg1: i32) -> (i32, i32, i32) {
    %c0_i32 = arith.constant 0 : i32
    %c0_i32_0 = arith.constant 0 : i32
    %c0_i32_1 = arith.constant 0 : i32
    return %arg0, %c0_i32, %c0_i32_0 : i32, i32, i32
  }
  func.func @transform_6(%arg0: i32, %arg1: i32) -> (i32, i32, i32) {
    %c0_i32 = arith.constant 0 : i32
    %c0_i32_0 = arith.constant 0 : i32
    %c0_i32_1 = arith.constant 0 : i32
    return %arg0, %c0_i32, %c0_i32_0 : i32, i32, i32
  }
  func.func @transform_7(%arg0: i32, %arg1: i32) -> (i32, i32, i32) {
    %c0_i32 = arith.constant 0 : i32
    %c0_i32_0 = arith.constant 0 : i32
    %c0_i32_1 = arith.constant 0 : i32
    return %arg0, %c0_i32, %c0_i32_0 : i32, i32, i32
  }
  func.func @transform_8(%arg0: i32, %arg1: i32) -> (i32, i32, i32) {
    %c0_i32 = arith.constant 0 : i32
    %c0_i32_0 = arith.constant 0 : i32
    %c0_i32_1 = arith.constant 0 : i32
    return %arg0, %c0_i32, %c0_i32_0 : i32, i32, i32
  }
  func.func @transform_9(%arg0: i32, %arg1: i32) -> (i32, i32, i32) {
    %c0_i32 = arith.constant 0 : i32
    %c0_i32_0 = arith.constant 0 : i32
    %c0_i32_1 = arith.constant 0 : i32
    return %arg0, %c0_i32, %c0_i32_0 : i32, i32, i32
  }
  func.func @transform_10(%arg0: i32, %arg1: i32) -> (i32, i32, i32) {
    %c0_i32 = arith.constant 0 : i32
    %c0_i32_0 = arith.constant 0 : i32
    return %arg0, %arg1, %c0_i32 : i32, i32, i32
  }
}

</mosaic_0001>

<bundles_post_ra>
// kernel: tpu_custom_call.1
= control target key start
LH: loop header
LB: loop body
LE: loop exit
PB: predicated region body
PF: predicated region fallthrough
CT: control target
= control target key end

     0   :  { %15 = vsyncpa [#allocation3], 0  ;;  %s683_s0 = inlined_call_operand.vmem [shape: f32[6,3], index: 0, kind: input, shape index: {}]   ;;  %s684_s1 = inlined_call_operand.vmem [shape: f32[1,6,16], index: 1, kind: input, shape index: {}]   ;;  %s685_s2 = inlined_call_operand.vmem [shape: s32[1,6,1], index: 2, kind: input, shape index: {}]   ;;  %s686_s3 = inlined_call_operand.hbm [shape: f32[1,16,32], index: 3, kind: input, shape index: {}]   ;;  %s687_s4 = inlined_call_operand.hbm [shape: f32[1,1,32], index: 4, kind: input, shape index: {}]   ;;  %s688_s5 = inlined_call_operand.vmem [shape: f32[1,32,32], index: 5, kind: input, shape index: {}]   ;;  %s689_s6 = inlined_call_operand.vmem [shape: f32[1,3,32], index: 6, kind: input, shape index: {}]   ;;  %s690_s7 = inlined_call_operand.vmem [shape: f32[1,1,32], index: 7, kind: input, shape index: {}]   ;;  %s691_s8 = inlined_call_operand.vmem [shape: f32[1,32,128], index: 8, kind: input, shape index: {}]   ;;  %s692_s9 = inlined_call_operand.vmem [shape: f32[1,1,128], index: 9, kind: input, shape index: {}]   ;;  %s693_s10 = inlined_call_operand.vmem [shape: f32[1,6,128], index: 10, kind: output, shape index: {}]  }
   0x1   :  { %16 = vsyncpa [#allocation5], 0  ;;  %s545_s13 = smov [#allocation2]   ;;  %s497_s17 = scalar_lea.hbm %s686_s3, 256 }
   0x2   :  { %s28_s14 = sshll.u32 %s545_s13, 4  ;;  %p498_p0 = scmp.ne.s32.totalorder %s686_s3, %s497_s17  ;;  %s29_s14 = int_to_ptr.vmem [resolvable:$true] %s28_s14 }
   0x3   :  { %p501_p1 = scmp.lt.u32.totalorder %s497_s17, %s686_s3 }
   0x5   :  { %p503_p2 = pnand %p501_p1, %p498_p0 }
   0x7   :  { %506 = shalt.err (!%p503_p2)
}
   0x8   :  { %s507_s22 = scalar_lea.vmem %s29_s14, 256  ;;  %p512_p4 = scmp.lt.s32.totalorder %s29_s14, %s29_s14 }
   0x9   :  { %p508_p3 = scmp.ne.s32.totalorder %s29_s14, %s507_s22  ;;  %p513_p5 = scmp.lt.s32.totalorder %s507_s22, %s507_s22 }
   0xb   :  { %p514_p6 = por %p513_p5, %p512_p4 }
   0xd   :  { %p515_p7 = pnand %p514_p6, %p508_p3 }
   0xf   :  { %518 = shalt.err (!%p515_p7)
}
  0x10   :  { %s546_s23 = smov 128   ;;  %s547_s24 = smov 8  }
  0x11   :  { %34 = dma.hbm_to_vmem [thread:$0]  %s686_s3, 256, %s29_s14, [#allocation3], %s546_s23, %s546_s23, %s547_s24  }
  0x12   :  { %s548_s27 = smov [#allocation4]   ;;  %s519_s11 = scalar_lea.hbm %s687_s4, 16 }
  0x13   :  { %s41_s28 = sshll.u32 %s548_s27, 4  ;;  %p520_p8 = scmp.ne.s32.totalorder %s687_s4, %s519_s11  ;;  %s42_s28 = int_to_ptr.vmem [resolvable:$true] %s41_s28 }
  0x14   :  { %p523_p9 = scmp.lt.u32.totalorder %s519_s11, %s687_s4 }
  0x16   :  { %p525_p10 = pnand %p523_p9, %p520_p8 }
  0x18   :  { %528 = shalt.err (!%p525_p10)
}
  0x19   :  { %s529_s17 = scalar_lea.vmem %s42_s28, 16  ;;  %s533_s3 = scalar_lea.vmem %s42_s28, 32 }
  0x1a   :  { %p530_p11 = scmp.ne.s32.totalorder %s42_s28, %s529_s17  ;;  %p534_p12 = scmp.lt.s32.totalorder %s42_s28, %s42_s28 }
  0x1b   :  { %p535_p13 = scmp.lt.s32.totalorder %s533_s3, %s529_s17 }
  0x1d   :  { %p536_p0 = por %p535_p13, %p534_p12 }
  0x1f   :  { %p537_p1 = pnand %p536_p0, %p530_p11 }
  0x21   :  { %540 = shalt.err (!%p537_p1)
}
  0x22   :  { %44 = dma.hbm_to_vmem [thread:$0]  %s687_s4, 16, %s42_s28, [#allocation5]  }
  0x23   :  { %541 = dma.done.wait [#allocation3], 256  }
  0x24   :  { %542 = vsyncadd [#allocation3], 4294967040 }
  0x25   :  { %543 = dma.done.wait [#allocation5], 16  }
  0x26   :  { %544 = vsyncadd [#allocation5], 4294967280  ;;  %v549_v0 = vmov 0.0|0.0   ;;  %vm550_vm0 = vmmov 0   ;;  %v551_v1 = vmov 0.0   ;;  %vm156_vm1 = vcmask 1042432  }
  0x27   :  { %473 = vmatprep.subr.bf16.mxu0 %v549_v0  ;;  %443 = vmatprep.mubr.msk.f32.mxu0 %vm550_vm0, %v551_v1  ;;  %v62_v2 = vld [vmem:[#allocation2] sm:$0xff]  ;;  %v63_v3 = vld [vmem:[#allocation2 + $0x8] sm:$0xff]  ;;  %vm152_vm2 = vcmask 23552   ;;  %vm71_vm3 = vcmask 130048   ;;  %v148_v11 = vld [vmem:[%s688_s5 + $0x10] sm:$0xff]  ;;  %vm230_vm4 = vcmask 261120   ;;  %v397_v35 = vlaneseq }
  0x28   :  { %446 = vmatprep.subr.mxu1 %v551_v1  ;;  %448 = vmatprep.mubr.msk.f32.mxu1 %vm550_vm0, %v551_v1  ;;  %v474_v4 = vpack.c.bf16 %v63_v3, %v62_v2  ;;  %v151_v5 = vld [vmem:[%s689_s6] sm:$0x7]  ;;  %v147_v8 = vld [vmem:[%s688_s5 + $0x8] sm:$0xff]  ;;  %v149_v12 = vld [vmem:[%s688_s5 + $0x18] sm:$0xff]  ;;  %v552_v28 = vmov 0  }
  0x29   :  { %v150_v6 = vld [vmem:[%s683_s0] sm:$0x3f]  ;;  %447 = vmatpush3.msk.msra.mxu1 %vm156_vm1, %v151_v5  ;;  %v480_v13 = vpack.c.bf16 %v149_v12, %v148_v11  ;;  %v416_v15 = vld [vmem:[#allocation4] ss:$0 sm:$0xff]  ;;  %v314_v22 = vld [vmem:[%s691_s8 + $0x8] sm:$0xff]  ;;  %496 = vset.pattern.permute.xlu0 %v552_v28  ;;  %v398_v36 = vand.u32 127, %v397_v35 }
  0x2a   :  { %v146_v7 = vld [vmem:[%s688_s5] sm:$0xff]  ;;  %475 = vmatpush3.bf16.msra.mxu0 %v474_v4  ;;  %449 = vmatmul.mubr.msk.f32.vlgmr.msra.gmra.mrb[0].mxu1 %vm152_vm2, %v150_v6  ;;  %v315_v24 = vld [vmem:[%s691_s8 + $0x10] sm:$0xff]  ;;  %v316_v25 = vld [vmem:[%s691_s8 + $0x18] sm:$0xff] }
  0x2b   :  { %v61_v9 = vld [vmem:[%s684_s1] sm:$0x3f]  ;;  %v477_v10 = vpack.c.bf16 %v147_v8, %v146_v7  ;;  %476 = vmatprep.subr.bf16.mxu1 %v549_v0  ;;  %459 = vmatprep.mubr.msk.f32.mxu1 %vm550_vm0, %v551_v1  ;;  %v486_v26 = vpack.c.bf16 %v316_v25, %v315_v24  ;;  %vm400_vm5 = vcmp.lt.s32.totalorder %v398_v36, 31 }
  0x2c   :  { %482 = vmatprep.subr.bf16.mxu0 %v549_v0  ;;  %v313_v21 = vld [vmem:[%s691_s8] sm:$0xff]  ;;  %v401_v37 = vsel %vm400_vm5, %v398_v36, 31 }
  0x2d   :  { %478 = vmatpush3.bf16.msra.mxu1 %v477_v10  ;;  %444 = vmatmul.mubr.msk.f32.vlgmr.msra.gmra.mrb[0].mxu0 %vm71_vm3, %v61_v9  ;;  %v483_v23 = vpack.c.bf16 %v314_v22, %v313_v21  ;;  %v399_v27 = vld [vmem:[%s685_s2] sm:$0x3f] }
  0x2e   :  { %479 = vmatprep.subr.bf16.mxu1 %v549_v0  ;;  %470 = vmatprep.mubr.msk.f32.mxu0 %vm550_vm0, %v551_v1  ;;  %v421_v30 = vld [vmem:[%s690_s7] ss:$0 sm:$0xff] }
  0x2f   :  { %484 = vmatpush3.bf16.msra.mxu0 %v483_v23  ;;  %403 = vperm.xlu0 %496, %v399_v27   ;;  %v422_v41 = vld [vmem:[%s692_s9] ss:$0 sm:$0xff] }
  0x30   :  { %485 = vmatprep.subr.bf16.mxu0 %v549_v0 }
  0x31   :  { %481 = vmatpush3.bf16.msra.mxu1 %v480_v13 }
  0x33   :  { %487 = vmatpush3.bf16.msra.mxu0 %v486_v26 }
  0xae   :  { %v404_v38 = vpop.permute.xlu0 %403 }
  0xaf   :  { %v405_v39 = vshra.s32 %v404_v38, %v401_v37 }
  0xb1   :  { %v406_v40 = vand.u32 1, %v405_v39 }
  0xb3   :  { %vm407_vm6 = vcmp.eq.s32.totalorder %v406_v40, 0 }
  0xfd   :  { %v226_v14 = vpop.f32.mrb[0].mxu1 }
  0xfe   :  { %v450_v16 = vpop.f32.mrb[1].mxu1 }
 0x100   :  { %v141_v17 = vpop.f32.mrb[0].mxu0 }
 0x101   :  { %v142_v18 = vadd.f32 %v416_v15, %v141_v17  ;;  %v445_v19 = vpop.f32.mrb[1].mxu0 }
 0x103   :  { %v145_v20 = vmax.f32 %v142_v18, 0.0 }
 0x105   :  { %460 = vmatmul.mubr.msk.f32.vlgmr.msra.gmra.mrb[2].mxu1 %vm230_vm4, %v145_v20 }
 0x1d8   :  { %v300_v29 = vpop.f32.mrb[2].mxu1 }
 0x1d9   :  { %v301_v31 = vadd.f32 %v300_v29, %v226_v14  ;;  %v461_v32 = vpop.f32.mrb[3].mxu1 }
 0x1db   :  { %v311_v33 = vadd.f32 %v421_v30, %v301_v31 }
 0x1dd   :  { %v312_v34 = vmax.f32 %v311_v33, 0.0 }
 0x1df   :  { %471 = vmatmul.mubr.msk.f32.vlgmr.msra.gmra.mrb[2].mxu0 %vm230_vm4, %v312_v34 }
 0x2b2   :  { %v393_v42 = vpop.f32.mrb[2].mxu0 }
 0x2b3   :  { %v394_v43 = vadd.f32 %v422_v41, %v393_v42  ;;  %v472_v44 = vpop.f32.mrb[3].mxu0 }
 0x2b5   :  { %v408_v45 = vsel %vm407_vm6, -1e+10, %v394_v43 }
 0x2b6   :  { %409 = vst [vmem:[%s693_s10] sm:$0x3f] %v408_v45 }
 0x2b7   :  { %414 = vsyncpa [#allocation3], 1 }
 0x2b8   :  { %415 = vsyncpa [#allocation5], 1 }

</bundles_post_ra>
